<compile_context>
chip_gen: v7x
topology: tpu7x:2x2x1
jax: 0.10.0
libtpu: 0.0.40
codegen_flags: <defaults>
</compile_context>

<pallas_src>
import functools

import jax
import jax.numpy as jnp
from jax.experimental import pallas as pl
from jax.experimental.pallas import tpu as pltpu


def _round_up(x, m):
    return ((x + m - 1) // m) * m


def _milnce_kernel(sim_ref, w_ref, gate_ref, out_ref, *, t):
    # sim_ref:  (TM, N) native dtype (bf16/f32) -> cast to f32 for compute
    # w_ref:    (TM, N) int8, 1 where target_mask == 1 else 0
    # gate_ref: (TM, 1) f32, 1.0 where target_mask[:, 0] != 0 else 0.0
    # out_ref:  (1, 8, 128) f32, filled with this tile's loss sum
    s = sim_ref[...].astype(jnp.float32) * t                       # (TM, N)
    w = w_ref[...].astype(jnp.float32) + 1e-24                     # (TM, N)

    # Row-wise max-shifted exponentials (stable). The +m terms of the two
    # log-sums cancel in (nominator - denominator), so they are dropped.
    m = jnp.max(s, axis=1, keepdims=True)                          # (TM, 1)
    e = jnp.exp(s - m)                                             # (TM, N)

    nominator = jnp.log(jnp.sum(e * w, axis=1, keepdims=True))     # (TM, 1)
    denominator = jnp.log(jnp.sum(e, axis=1, keepdims=True))       # (TM, 1)

    loss = -(nominator - denominator) * gate_ref[...]              # (TM, 1)

    tile_sum = jnp.sum(loss)
    out_ref[...] = jnp.full((1, 8, 128), tile_sum, dtype=jnp.float32)


def milnce_loss(sim_score, target_mask, t=1.0, tm=256):
    """Pallas implementation of MILNCE.forward. Returns a scalar float32."""
    sim_score = jnp.asarray(sim_score)
    if sim_score.dtype not in (jnp.bfloat16, jnp.float32):
        sim_score = sim_score.astype(jnp.float32)
    target_mask = jnp.asarray(target_mask)
    M, N = sim_score.shape
    assert target_mask.shape == (M, N)

    # Host-side (cheap XLA elementwise) precompute of the compact inputs:
    # positive indicator as int8 and the column-0 row gate as (M, 1) f32.
    w_i8 = (target_mask == 1).astype(jnp.int8)
    gate = (target_mask[:, 0:1] != 0).astype(jnp.float32)

    # Row tile: multiple of 32 (int8 sublane tiling) and >= 32. Keep the
    # default modest so 2 dtype-narrow inputs x 2 pipeline buffers stay well
    # under the scoped-VMEM defaults on all generations (incl. v7x's 64 MiB).
    tm = max(32, min(int(tm), _round_up(M, 32)))
    tm = _round_up(tm, 32)
    m_pad = _round_up(M, tm)
    if m_pad != M:
        pad = m_pad - M
        sim_score = jnp.pad(sim_score, ((0, pad), (0, 0)))
        w_i8 = jnp.pad(w_i8, ((0, pad), (0, 0)))
        gate = jnp.pad(gate, ((0, pad), (0, 0)))   # padded rows gated to 0

    g = m_pad // tm
    partials = pl.pallas_call(
        functools.partial(_milnce_kernel, t=float(t)),
        out_shape=jax.ShapeDtypeStruct((g, 8, 128), jnp.float32),
        grid=(g,),
        in_specs=[
            pl.BlockSpec((tm, N), lambda i: (i, 0)),
            pl.BlockSpec((tm, N), lambda i: (i, 0)),
            pl.BlockSpec((tm, 1), lambda i: (i, 0)),
        ],
        out_specs=pl.BlockSpec((1, 8, 128), lambda i: (i, 0, 0)),
        compiler_params=pltpu.CompilerParams(
            dimension_semantics=("parallel",),
        ),
    )(sim_score, w_i8, gate)

    # Mean over the ORIGINAL number of rows (padded rows contribute 0);
    # 1/M is a compile-time constant multiply.
    return jnp.sum(partials[:, 0, 0]) * jnp.float32(1.0 / M)


def _milnce_ref(sim_score, target_mask, t=1.0):
    """Pure-JAX reference mirroring the PyTorch code line-by-line."""
    sim_score = jnp.asarray(sim_score, jnp.float32)
    target_mask = jnp.asarray(target_mask, jnp.float32)
    nominator = jnp.log(
        (jnp.exp(t * sim_score)
         * ((target_mask == 1).astype(jnp.float32) + 1e-24)).sum(axis=1))
    denominator = jax.scipy.special.logsumexp(t * sim_score, axis=1)
    loss = -(nominator - denominator) * (target_mask[:, 0] != 0).astype(jnp.float32)
    return loss.mean()


if __name__ == "__main__":
    # Small shapes consistent with the module's docstring:
    #   sim_score / target_mask are (N_all - batch_sz, N_all)
    batch_sz = 20
    n_all = 140
    M = n_all - batch_sz          # 120  (not a multiple of the row tile ->
    N = n_all                     # 140   exercises the padding path)

    key = jax.random.PRNGKey(0)
    k_sim, k_mask = jax.random.split(key)

    sim_score = jax.random.normal(k_sim, (M, N), dtype=jnp.float32)
    # 0/1 target mask; some rows have target_mask[:, 0] == 0 so the row-gate
    # path is exercised.
    target_mask = (jax.random.uniform(k_mask, (M, N)) > 0.5).astype(jnp.float32)
    # Make sure every row has at least one positive.
    target_mask = target_mask.at[:, 1].set(1.0)

    t = 1.0
    # tm=32 -> 4 row tiles plus padded rows: exercises the grid, the
    # per-tile partial-sum output and the padding masking.
    out = milnce_loss(sim_score, target_mask, t=t, tm=32)
    out = jax.block_until_ready(out)

    ref = _milnce_ref(sim_score, target_mask, t=t)
    assert jnp.allclose(out, ref, rtol=1e-5, atol=1e-5), (out, ref)

    print("KERNEL_OK")
</pallas_src>

<mosaic_0001>
module attributes {stable_mosaic.version = 11 : i64} {
  func.func @_milnce_kernel(%arg0: i32, %arg1: memref<32x140xf32, #tpu.memory_space<vmem>>, %arg2: memref<32x140xi8, #tpu.memory_space<vmem>>, %arg3: memref<32x1xf32, #tpu.memory_space<vmem>>, %arg4: memref<1x8x128xf32, #tpu.memory_space<vmem>>) attributes {dimension_semantics = [#tpu.dimension_semantics<parallel>], iteration_bounds = array<i64: 4>, scalar_prefetch = 0 : i64, scratch_operands = 0 : i64, tpu.core_type = #tpu.core_type<tc>, window_params = [{transform_indices = @transform_0, window_bounds = array<i64: 32, 140>}, {transform_indices = @transform_1, window_bounds = array<i64: 32, 140>}, {transform_indices = @transform_2, window_bounds = array<i64: 32, 1>}, {transform_indices = @transform_3, window_bounds = array<i64: 1, 8, 128>}]} {
    %c0 = arith.constant 0 : index
    %c0_0 = arith.constant 0 : index
    %0 = vector.load %arg1[%c0, %c0_0] : memref<32x140xf32, #tpu.memory_space<vmem>>, vector<32x140xf32>
    %cst = arith.constant 1.000000e+00 : f32
    %1 = vector.broadcast %cst : f32 to vector<32x140xf32>
    %2 = arith.mulf %0, %1 : vector<32x140xf32>
    %c0_1 = arith.constant 0 : index
    %c0_2 = arith.constant 0 : index
    %3 = vector.load %arg2[%c0_1, %c0_2] : memref<32x140xi8, #tpu.memory_space<vmem>>, vector<32x140xi8>
    %4 = arith.sitofp %3 : vector<32x140xi8> to vector<32x140xf32>
    %cst_3 = arith.constant 1.000000e-24 : f32
    %5 = vector.broadcast %cst_3 : f32 to vector<32x140xf32>
    %6 = arith.addf %4, %5 : vector<32x140xf32>
    %cst_4 = arith.constant dense<0xFF800000> : vector<32xf32>
    %7 = vector.multi_reduction <maximumf>, %2, %cst_4 [1] : vector<32x140xf32> to vector<32xf32>
    %8 = vector.shape_cast %7 : vector<32xf32> to vector<32x1xf32>
    %9 = vector.broadcast %8 : vector<32x1xf32> to vector<32x140xf32>
    %10 = arith.subf %2, %9 : vector<32x140xf32>
    %11 = math.exp %10 : vector<32x140xf32>
    %12 = arith.mulf %11, %6 : vector<32x140xf32>
    %cst_5 = arith.constant dense<0.000000e+00> : vector<32xf32>
    %13 = vector.multi_reduction <add>, %12, %cst_5 [1] : vector<32x140xf32> to vector<32xf32>
    %14 = vector.shape_cast %13 : vector<32xf32> to vector<32x1xf32>
    %15 = math.log %14 : vector<32x1xf32>
    %cst_6 = arith.constant dense<0.000000e+00> : vector<32xf32>
    %16 = vector.multi_reduction <add>, %11, %cst_6 [1] : vector<32x140xf32> to vector<32xf32>
    %17 = vector.shape_cast %16 : vector<32xf32> to vector<32x1xf32>
    %18 = math.log %17 : vector<32x1xf32>
    %19 = arith.subf %15, %18 : vector<32x1xf32>
    %cst_7 = arith.constant 0.000000e+00 : f32
    %20 = vector.broadcast %cst_7 : f32 to vector<32x1xf32>
    %21 = arith.subf %20, %19 : vector<32x1xf32>
    %c0_8 = arith.constant 0 : index
    %c0_9 = arith.constant 0 : index
    %22 = vector.load %arg3[%c0_8, %c0_9] : memref<32x1xf32, #tpu.memory_space<vmem>>, vector<32x1xf32>
    %23 = arith.mulf %21, %22 : vector<32x1xf32>
    %24 = vector.shape_cast %23 : vector<32x1xf32> to vector<1x32x1xf32>
    %cst_10 = arith.constant dense<0.000000e+00> : vector<1xf32>
    %25 = vector.multi_reduction <add>, %24, %cst_10 [1, 2] : vector<1x32x1xf32> to vector<1xf32>
    %26 = vector.shape_cast %25 : vector<1xf32> to vector<1x1x1xf32>
    %27 = vector.extract %26[0, 0, 0] : f32 from vector<1x1x1xf32>
    %28 = vector.broadcast %27 : f32 to vector<1x8x128xf32>
    %c0_11 = arith.constant 0 : index
    %c0_12 = arith.constant 0 : index
    %c0_13 = arith.constant 0 : index
    %29 = vector.load %arg4[%c0_11, %c0_12, %c0_13] : memref<1x8x128xf32, #tpu.memory_space<vmem>>, vector<1x8x128xf32>
    tpu.vector_store %arg4[%c0_11, %c0_12, %c0_13], %28 {strides = array<i32>} : memref<1x8x128xf32, #tpu.memory_space<vmem>>, vector<1x8x128xf32>,
    return
  }
  func.func @transform_0(%arg0: i32) -> (i32, i32) {
    %c0_i32 = arith.constant 0 : i32
    %c0_i32_0 = arith.constant 0 : i32
    return %arg0, %c0_i32 : i32, i32
  }
  func.func @transform_1(%arg0: i32) -> (i32, i32) {
    %c0_i32 = arith.constant 0 : i32
    %c0_i32_0 = arith.constant 0 : i32
    return %arg0, %c0_i32 : i32, i32
  }
  func.func @transform_2(%arg0: i32) -> (i32, i32) {
    %c0_i32 = arith.constant 0 : i32
    %c0_i32_0 = arith.constant 0 : i32
    return %arg0, %c0_i32 : i32, i32
  }
  func.func @transform_3(%arg0: i32) -> (i32, i32, i32) {
    %c0_i32 = arith.constant 0 : i32
    %c0_i32_0 = arith.constant 0 : i32
    %c0_i32_1 = arith.constant 0 : i32
    return %arg0, %c0_i32, %c0_i32_0 : i32, i32, i32
  }
}

</mosaic_0001>

<bundles_post_ra>
// kernel: tpu_custom_call.1
= control target key start
LH: loop header
LB: loop body
LE: loop exit
PB: predicated region body
PF: predicated region fallthrough
CT: control target
= control target key end

     0   :  { %8 = vsyncpa [#allocation3], 0  ;;  %s778_s0 = inlined_call_operand.vmem [shape: f32[128,140], index: 0, kind: input, shape index: {}]   ;;  %s779_s1 = inlined_call_operand.vmem [shape: s8[128,140], index: 1, kind: input, shape index: {}]   ;;  %s780_s2 = inlined_call_operand.vmem [shape: f32[128,1], index: 2, kind: input, shape index: {}]   ;;  %s781_s3 = inlined_call_operand.hbm [shape: f32[4,8,128], index: 3, kind: output, shape index: {}]  }
   0x1   :  { %10 = vsyncpa [#allocation3 + $0x1], 0  ;;  %s655_s12 = smov 0   ;;  %s657_s13 = smov 0  }
   0x2   :  { %s659_s14 = smov 0   ;;  %s661_s15 = smov 0  }
   0x3 LB: > { %s676_s16 = sadd.s32 4294967295, %s632_s15   ;;  %s479_s17 = sadd.s32 4294967294, %s632_s15   ;;  %s632_s15 = sphi %s661_s15, %s787_s15   ;;  %s628_s14 = sphi %s659_s14, %s786_s14   ;;  %s624_s13 = sphi %s657_s13, %s785_s13   ;;  %s620_s12 = sphi %s655_s12, %s784_s12  }
   0x4   : > { %s680_s18 = sadd.s32 1, %s632_s15   ;;  %s101_s19 = sadd.s32 1, %s628_s14 }
   0x5   : > { %s98_s20 = ssub.s32 %s632_s15, %s680_s18  ;;  %p111_p0 = scmp.ne.s32.totalorder %s628_s14, %s624_s13 }
   0x6   : > { %p99_p1 = scmp.eq.s32.totalorder %s98_s20, 0  ;;  %p112_p2 = scmp.eq.s32.totalorder %s676_s16, 3 }
   0x7   : > { %p117_p3 = scmp.ne.s32.totalorder %s624_s13, %s620_s12  ;;  %p118_p4 = scmp.eq.s32.totalorder %s479_s17, 3 }
   0x8   : > { %s691_s21 = scalar_select %p99_p1, %s628_s14, %s101_s19  }
   0x9   : > { %p693_p5 = por %p112_p2, %p111_p0  ;;  %p697_p6 = por %p118_p4, %p117_p3 }
   0xa   : > { %p482_p7 = scmp.ge.s32.totalorder %s632_s15, 1  ;;  %p163_p8 = scmp.lt.s32.totalorder %s632_s15, 5 }
   0xc   : > { %p164_p9 = pnand %p482_p7, %p163_p8 }
   0xd   : > { %s484_s24 = sshll.u32 (!%p164_p9), %s676_s16, 2  ;;  %vm250_vm0 = vcmask (!%p164_p9), 97280   ;;  %p205_p11 = scmp.lt.s32.totalorder (!%p164_p9), %s676_s16, 3  ;;  %vm363_vm1 = vcmask (!%p164_p9), 7168  }
   0xe   : > { %167 = sbr.rel (%p164_p9) target bundleno = 588 (0x24c), region = 32  ;;  %p199_p10 = scmp.lt.s32.totalorder (!%p164_p9), %s484_s24, 15 }
   0xf   : > { %s195_s11 = sand.u32 (!%p164_p9), 1, %s624_s13  }
  0x10   : > { %s483_s17 = sshll.u32 (!%p164_p9), %s195_s11, 3 }
  0x11   : > { %s197_s19 = scalar_lea.vmem (!%p164_p9), [#allocation2], %s483_s17 }
  0x12   : > { %s396_s20 = sshll.u32 (!%p164_p9), %s197_s19, 4  ;;  %s733_s20 = int_to_ptr.vmem [resolvable:$true] %s396_s20 }
  0x15   : > { %s789_s24 = smov (!%p199_p10, %s484_s24), 15 }
  0x16   : > { %s495_s25 = sshll.u32 %s789_s24, 4  ;;  %s490_s7 = sshll.u32 %s789_s24, 3 }
  0x17   : > { %s203_s28 = scalar_lea.vmem %s778_s0, %s495_s25  ;;  %s214_s10 = scalar_lea.vmem %s780_s2, %s490_s7 }
  0x18   : > { %v216_v0 = vld [vmem:[%s203_s28] sm:$0xff]  ;;  %v217_v1 = vld [vmem:[%s203_s28 + $0x8] sm:$0xff]  ;;  %v218_v2 = vld [vmem:[%s203_s28 + $0x10] sm:$0xff]  ;;  %s206_s29 = scalar_select %p205_p11, %s676_s16, 3 }
  0x19   : > { %v251_v3 = vsel %vm250_vm0, %v217_v1, -inf  ;;  %v219_v4 = vld [vmem:[%s203_s28 + $0x18] sm:$0xff]  ;;  %v220_v5 = vld [vmem:[%s203_s28 + $0x20] sm:$0xff]  ;;  %v221_v6 = vld [vmem:[%s203_s28 + $0x28] sm:$0xff]  ;;  %s492_s24 = sshll.u32 %s676_s16, 7  ;;  %s634_s16 = smov [#allocation2]  }
  0x1a   : > { %v252_v7 = vmax.f32 %v216_v0, %v251_v3  ;;  %v255_v8 = vsel %vm250_vm0, %v219_v4, -inf  ;;  %v259_v9 = vsel %vm250_vm0, %v221_v6, -inf  ;;  %v222_v10 = vld [vmem:[%s203_s28 + $0x30] sm:$0xff]  ;;  %v223_v11 = vld [vmem:[%s203_s28 + $0x38] sm:$0xff]  ;;  %s496_s30 = sshll.u32 %s206_s29, 4  ;;  %s738_s28 = scalar_lea.hbm %s781_s3, %s492_s24 }
  0x1b   : > { %v260_v12 = vmax.f32 %v220_v5, %v259_v9  ;;  %v263_v13 = vsel %vm250_vm0, %v223_v11, -inf  ;;  %v256_v14 = vmax.f32 %v218_v2, %v255_v8  ;;  %s209_s6 = scalar_lea.vmem %s779_s1, %s496_s30  ;;  %s383_s29 = scalar_lea.sflag [#allocation3], %s195_s11 }
  0x1c   : > { %253 = vmax.xlane.f32.xlu0 %v252_v7  ;;  %v264_v15 = vmax.f32 %v222_v10, %v263_v13  ;;  %v225_v22 = vld [vmem:[%s209_s6 + $0x8] sm:$0xff]  ;;  %v224_v25 = vld [vmem:[%s209_s6] sm:$0xff]  ;;  %s570_s30 = scalar_lea.vmem %s733_s20, 128  ;;  %s574_s4 = sshll.u32 %s634_s16, 4  ;;  %s575_s4 = int_to_ptr.vmem [resolvable:$false] %s574_s4 }
  0x1d   : > { %261 = vmax.xlane.f32.xlu1 %v260_v12  ;;  %v227_v32 = vunpack.c.0.s8 %v225_v22  ;;  %v226_v35 = vunpack.c.0.s8 %v224_v25  ;;  %v231_v38 = vunpack.c.2.s8 %v225_v22  ;;  %v230_v41 = vunpack.c.2.s8 %v224_v25  ;;  %p571_p12 = scmp.ne.s32.totalorder %s733_s20, %s570_s30  ;;  %s576_s5 = scalar_lea.vmem %s575_s4, 256 }
  0x1e   : > { %v229_v45 = vunpack.c.1.s8 %v225_v22  ;;  %v233_v46 = vunpack.c.3.s8 %v225_v22  ;;  %v232_v48 = vunpack.c.3.s8 %v224_v25  ;;  %v228_v51 = vunpack.c.1.s8 %v224_v25  ;;  %p577_p1 = scmp.lt.s32.totalorder %s733_s20, %s575_s4  ;;  %p578_p2 = scmp.lt.s32.totalorder %s576_s5, %s570_s30 }
  0x1f   : > { %v235_v42 = vcvt.s32.f32 %v227_v32  ;;  %v234_v43 = vcvt.s32.f32 %v226_v35  ;;  %v239_v44 = vcvt.s32.f32 %v231_v38  ;;  %v238_v47 = vcvt.s32.f32 %v230_v41  ;;  %p572_p13 = pnand %p571_p12, %p693_p5 }
  0x20   : > { %257 = vmax.xlane.f32.xlu0 %v256_v14  ;;  %v237_v54 = vcvt.s32.f32 %v229_v45  ;;  %v241_v55 = vcvt.s32.f32 %v233_v46  ;;  %v240_v58 = vcvt.s32.f32 %v232_v48  ;;  %p579_p3 = por %p578_p2, %p577_p1 }
  0x21   : > { %265 = vmax.xlane.f32.xlu1 %v264_v15  ;;  %v243_v49 = vadd.f32 1e-24, %v235_v42  ;;  %v242_v50 = vadd.f32 1e-24, %v234_v43  ;;  %v247_v53 = vadd.f32 1e-24, %v239_v44  ;;  %p573_p0 = pneg %p572_p13 }
  0x22   : > { %v246_v57 = vadd.f32 1e-24, %v238_v47  ;;  %v248_v9 = vadd.f32 1e-24, %v240_v58 }
  0x23   : > { %p580_p4 = pnand %p579_p3, %p573_p0 }
  0xa9   : > { %v254_v16 = vpop.xlane.xlu0 %253 }
  0xaa   : > { %v267_v17 = vsub.f32 %v216_v0, %v254_v16  ;;  %v268_v18 = vsub.f32 %v217_v1, %v254_v16  ;;  %v262_v19 = vpop.xlane.xlu1 %261  ;;  %v236_v1 = vcvt.s32.f32 %v228_v51 }
  0xab   : > { %v271_v20 = vsub.f32 %v220_v5, %v262_v19  ;;  %v272_v21 = vsub.f32 %v221_v6, %v262_v19  ;;  %v245_v5 = vadd.f32 1e-24, %v237_v54  ;;  %v249_v6 = vadd.f32 1e-24, %v241_v55  ;;  %v355_v54 = vld [vmem:[%s214_s10] sm:$0xff] }
  0xac   : > { %v275_v23 = vmul.f32 1.442695, %v267_v17  ;;  %v277_v24 = vmul.f32 1.442695, %v268_v18  ;;  %v244_v17 = vadd.f32 1e-24, %v236_v1 }
  0xad   : > { %v258_v26 = vpop.xlane.xlu0 %257  ;;  %v283_v27 = vmul.f32 1.442695, %v271_v20  ;;  %v285_v28 = vmul.f32 1.442695, %v272_v21 }
  0xae   : > { %538 = vpow2.f32 %v275_v23  ;;  %v269_v29 = vsub.f32 %v218_v2, %v258_v26  ;;  %v270_v30 = vsub.f32 %v219_v4, %v258_v26  ;;  %v266_v31 = vpop.xlane.xlu1 %265 }
  0xaf   : > { %540 = vpow2.f32 %v277_v24  ;;  %v273_v33 = vsub.f32 %v222_v10, %v266_v31  ;;  %v274_v34 = vsub.f32 %v223_v11, %v266_v31 }
  0xb0   : > { %v279_v36 = vmul.f32 1.442695, %v269_v29  ;;  %v281_v37 = vmul.f32 1.442695, %v270_v30  ;;  %542 = vpow2.f32 %v283_v27 }
  0xb1   : > { %544 = vpow2.f32 %v285_v28  ;;  %v287_v39 = vmul.f32 1.442695, %v273_v33  ;;  %v289_v40 = vmul.f32 1.442695, %v274_v34 }
  0xb2   : > { %546 = vpow2.f32 %v279_v36 }
  0xb3   : > { %548 = vpow2.f32 %v281_v37 }
  0xb4   : > { %550 = vpow2.f32 %v287_v39 }
  0xb5   : > { %552 = vpow2.f32 %v289_v40 }
  0xb8   : > { %v539_v52 = vpop.eup %538 }
  0xb9   : > { %v541_v56 = vpop.eup %540  ;;  %v291_v0 = vmul.f32 %v539_v52, %v242_v50 }
  0xba   : > { %v543_v59 = vpop.eup %542  ;;  %v323_v60 = vsel %vm250_vm0, %v541_v56, 0.0  ;;  %v292_v61 = vmul.f32 %v541_v56, %v243_v49 }
  0xbb   : > { %v545_v62 = vpop.eup %544  ;;  %v324_v63 = vadd.f32 %v539_v52, %v323_v60  ;;  %v295_v8 = vmul.f32 %v543_v59, %v246_v57  ;;  %v357_v60 = vld [vmem:[%s214_s10 + $0x10] sm:$0xff] }
  0xbc   : > { %v547_v2 = vpop.eup %546  ;;  %v299_v3 = vsel %vm250_vm0, %v292_v61, 0.0  ;;  %v296_v4 = vmul.f32 %v545_v62, %v247_v53  ;;  %v331_v13 = vsel %vm250_vm0, %v545_v62, 0.0 }
  0xbd   : > { %v549_v7 = vpop.eup %548  ;;  %325 = vadd.xlane.f32.xlu0 %v324_v63  ;;  %v300_v15 = vadd.f32 %v299_v3, %v291_v0  ;;  %v332_v21 = vadd.f32 %v543_v59, %v331_v13  ;;  %v293_v24 = vmul.f32 %v547_v2, %v244_v17  ;;  %v356_v59 = vld [vmem:[%s214_s10 + $0x8] sm:$0xff]  ;;  %v358_v3 = vld [vmem:[%s214_s10 + $0x18] sm:$0xff] }
  0xbe   : > { %v551_v10 = vpop.eup %550  ;;  %v327_v11 = vsel %vm250_vm0, %v549_v7, 0.0  ;;  %v307_v12 = vsel %vm250_vm0, %v296_v4, 0.0  ;;  %v294_v18 = vmul.f32 %v549_v7, %v245_v5 }
  0xbf   : > { %v553_v14 = vpop.eup %552  ;;  %v328_v16 = vadd.f32 %v547_v2, %v327_v11  ;;  %v308_v20 = vadd.f32 %v307_v12, %v295_v8  ;;  %v297_v22 = vmul.f32 %v551_v10, %v248_v9 }
  0xc0   : > { %v298_v19 = vmul.f32 %v553_v14, %v249_v6  ;;  %v303_v25 = vsel %vm250_vm0, %v294_v18, 0.0  ;;  %v335_v28 = vsel %vm250_vm0, %v553_v14, 0.0 }
  0xc1   : > { %301 = vadd.xlane.f32.xlu0 %v300_v15  ;;  %329 = vadd.xlane.f32.xlu1 %v328_v16  ;;  %v304_v27 = vadd.f32 %v303_v25, %v293_v24  ;;  %v336_v29 = vadd.f32 %v551_v10, %v335_v28 }
  0xc2   : > { %v311_v23 = vsel %vm250_vm0, %v298_v19, 0.0 }
  0xc3   : > { %v312_v26 = vadd.f32 %v311_v23, %v297_v22 }
  0xc5   : > { %309 = vadd.xlane.f32.xlu0 %v308_v20  ;;  %333 = vadd.xlane.f32.xlu1 %v332_v21 }
  0xc9   : > { %305 = vadd.xlane.f32.xlu1 %v304_v27  ;;  %313 = vadd.xlane.f32.xlu0 %v312_v26 }
  0xcd   : > { %337 = vadd.xlane.f32.xlu1 %v336_v29 }
 0x14a   : > { %v326_v30 = vpop.xlane.xlu0 %325 }
 0x14b   : > { %554 = vlog2.f32 %v326_v30 }
 0x14e   : > { %v330_v31 = vpop.xlane.xlu1 %329  ;;  %v302_v32 = vpop.xlane.xlu0 %301 }
 0x14f   : > { %556 = vlog2.f32 %v302_v32 }
 0x152   : > { %v334_v33 = vpop.xlane.xlu1 %333  ;;  %v310_v34 = vpop.xlane.xlu0 %309 }
 0x153   : > { %558 = vlog2.f32 %v334_v33 }
 0x154   : > { %560 = vlog2.f32 %v310_v34 }
 0x155   : > { %562 = vlog2.f32 %v330_v31  ;;  %v555_v37 = vpop.eup %554 }
 0x156   : > { %v306_v35 = vpop.xlane.xlu1 %305  ;;  %v314_v36 = vpop.xlane.xlu0 %313  ;;  %v340_v41 = vmul.f32 0.6931472, %v555_v37 }
 0x157   : > { %564 = vlog2.f32 %v306_v35 }
 0x158   : > { %566 = vlog2.f32 %v314_v36 }
 0x159   : > { %v557_v38 = vpop.eup %556 }
 0x15a   : > { %v338_v39 = vpop.xlane.xlu1 %337  ;;  %v316_v40 = vmul.f32 0.6931472, %v557_v38 }
 0x15b   : > { %568 = vlog2.f32 %v338_v39 }
 0x15c   : > { %v347_v44 = vsub.f32 %v316_v40, %v340_v41 }
 0x15d   : > { %v559_v42 = vpop.eup %558 }
 0x15e   : > { %v561_v43 = vpop.eup %560  ;;  %v344_v45 = vmul.f32 0.6931472, %v559_v42  ;;  %v351_v52 = vsub.f32 0.0, %v347_v44 }
 0x15f   : > { %v563_v46 = vpop.eup %562  ;;  %v320_v47 = vmul.f32 0.6931472, %v561_v43 }
 0x160   : > { %v342_v51 = vmul.f32 0.6931472, %v563_v46  ;;  %v359_v61 = vmul.f32 %v355_v54, %v351_v52 }
 0x161   : > { %v565_v48 = vpop.eup %564  ;;  %v349_v49 = vsub.f32 %v320_v47, %v344_v45 }
 0x162   : > { %v567_v50 = vpop.eup %566  ;;  %v318_v53 = vmul.f32 0.6931472, %v565_v48  ;;  %v364_v5 = vsel %vm363_vm1, %v359_v61, 0.0 }
 0x163   : > { %v353_v55 = vsub.f32 0.0, %v349_v49  ;;  %v322_v57 = vmul.f32 0.6931472, %v567_v50 }
 0x164   : > { %v348_v56 = vsub.f32 %v318_v53, %v342_v51 }
 0x165   : > { %v569_v58 = vpop.eup %568  ;;  %v361_v2 = vmul.f32 %v357_v60, %v353_v55 }
 0x166   : > { %v352_v62 = vsub.f32 0.0, %v348_v56  ;;  %v346_v63 = vmul.f32 0.6931472, %v569_v58 }
 0x167   : > { %v367_v9 = vsel %vm363_vm1, %v361_v2, 0.0 }
 0x168   : > { %v360_v0 = vmul.f32 %v356_v59, %v352_v62  ;;  %v350_v1 = vsub.f32 %v322_v57, %v346_v63 }
 0x16a   : > { %v354_v4 = vsub.f32 0.0, %v350_v1  ;;  %v365_v6 = vsel %vm363_vm1, %v360_v0, 0.0 }
 0x16b   : > { %v366_v7 = vadd.f32 %v365_v6, %v364_v5 }
 0x16c   : > { %v362_v8 = vmul.f32 %v358_v3, %v354_v4 }
 0x16d   : > { %v368_v10 = vadd.f32 %v367_v9, %v366_v7 }
 0x16e   : > { %v369_v11 = vsel %vm363_vm1, %v362_v8, 0.0 }
 0x16f   : > { %v370_v12 = vadd.f32 %v369_v11, %v368_v10 }
 0x171   : > { %371 = vadd.xlane.f32.xlu0 %v370_v12 }
 0x1fe   : > { %v372_v13 = vpop.xlane.xlu0 %371 }
 0x1ff   : > { %v373_v14 = vrot.slane %v372_v13, 4 }
 0x201   : > { %v374_v15 = vadd.f32 %v373_v14, %v372_v13 }
 0x203   : > { %v375_v16 = vrot.slane %v374_v15, 2 }
 0x205   : > { %v376_v17 = vadd.f32 %v375_v16, %v374_v15 }
 0x207   : > { %v377_v18 = vrot.slane %v376_v17, 1 }
 0x209   : > { %v378_v19 = vadd.f32 %v377_v18, %v376_v17 }
 0x20b   : > { %497 = vpush %v378_v19 }
 0x23c   : > { %s498_s25 = spop %497 }
 0x23d   : > { %v380_v20 = vstv %s498_s25 }
 0x23e   : > { %381 = vst [vmem:[%s197_s19] sm:$0xff] %v380_v20 }
 0x23f   : > { %583 = shalt.err (!%p580_p4)
}
 0x240   : > { %s584_s6 = scalar_lea.hbm %s738_s28, 128  ;;  %s588_s9 = scalar_lea.hbm %s781_s3, 512 }
 0x241   : > { %p585_p7 = scmp.ne.s32.totalorder %s738_s28, %s584_s6  ;;  %p589_p10 = scmp.lt.u32.totalorder %s738_s28, %s781_s3 }
 0x242   : > { %p590_p11 = scmp.lt.u32.totalorder %s588_s9, %s584_s6  ;;  %p592_p13 = scmp.lt.u32.totalorder %s584_s6, %s738_s28 }
 0x243   : > { %p586_p8 = pnand %p585_p7, %p693_p5 }
 0x244   : > { %p591_p12 = por %p590_p11, %p589_p10 }
 0x245   : > { %p587_p9 = pneg %p586_p8 }
 0x246   : > { %p593_p0 = por %p592_p13, %p591_p12 }
 0x248   : > { %p594_p1 = pnand %p593_p0, %p587_p9 }
 0x24a   : > { %597 = shalt.err (!%p594_p1)
}
 0x24b   : > { %499 = dma.vmem_to_hbm [thread:$0]  (%p693_p5), %s733_s20, 128, %s738_s28, %s383_s29  }
 0x24c PF: > { %p505_p2 = scmp.ge.s32.totalorder %s632_s15, 2  ;;  %s408_s17 = sand.u32 1, %s620_s12  }
 0x24d   : > { %s409_s19 = scalar_lea.sflag [#allocation3], %s408_s17 }
 0x24e   : > { %p502_p3 = pnand %p505_p2, %p697_p6 }
 0x250   : > { %615 = dma.done.wait (!%p502_p3), %s409_s19, 128  }
 0x251   : > { %617 = vsyncadd (!%p502_p3), %s409_s19, 4294967168  ;;  %p13_p4 = scmp.ge.s32.totalorder %s680_s18, 6   ;;  %s784_s12 = smov %s624_s13 }
 0x252   : > { %s785_s13 = smov %s628_s14  ;;  %s786_s14 = smov %s691_s21 }
 0x253   : > { %s787_s15 = smov %s680_s18  ;;  %15 = sbr.rel (!%p13_p4) target bundleno = 3 (0x3), region = 73 }
 0x25a   :  { %414 = vsyncpa [#allocation3], 1 }
 0x25b   :  { %416 = vsyncpa [#allocation3 + $0x1], 1 }

</bundles_post_ra>
